<compile_context>
chip_gen: v7x
topology: tpu7x:2x2x1
jax: 0.10.0
libtpu: 0.0.40
codegen_flags: <defaults>
</compile_context>

<pallas_src>
import jax
import jax.numpy as jnp
from jax.experimental import pallas as pl
from jax.experimental.pallas import tpu as pltpu


def _round_up(x, m):
    return (x + m - 1) // m * m


def _proj_kernel(ctx_ref, wt_ref, b_ref, out_ref):
    # ctx_ref : VMEM (tile_b, Dp)      bf16 summed context embeddings
    # wt_ref  : VMEM (Dp, tile_v)      bf16 pre-transposed linear-weight tile (W.T)
    # b_ref   : VMEM (1, tile_v)       f32 bias tile
    # out_ref : VMEM (tile_b, tile_v)  f32 logits tile
    out_ref[...] = (
        jnp.dot(ctx_ref[...], wt_ref[...], preferred_element_type=jnp.float32)
        + b_ref[...]
    ).astype(out_ref.dtype)


def cbow_forward(context_words, emb_table, weight, bias, *,
                 tile_b=None, tile_v=2048, compute_dtype=jnp.bfloat16):
    """CBOW forward: logits = (sum_c Emb[ctx[:, c]]) @ W.T + b.

    context_words: (B, C) int
    emb_table    : (V, D) float32   (nn.Embedding weight)
    weight       : (V, D) float32   (nn.Linear weight, PyTorch layout)
    bias         : (V,)   float32
    returns      : (B, V) float32 logits
    """
    B, C = context_words.shape
    V, D = emb_table.shape
    assert weight.shape == (V, D) and bias.shape == (V,)

    # ---- Embedding bag (gather + sum) in plain JAX: O(B*C*D), negligible next to the
    # O(B*V*D) projection, and it keeps the (V, D) table out of VMEM entirely.
    # TODO(synk): fuse as an in-kernel manual-DMA row gather (memory_space=pl.ANY +
    # scalar-prefetched indices) if the extra (B, D) HBM round-trip ever matters.
    idx = context_words.astype(jnp.int32)
    ctx = jnp.take(emb_table, idx, axis=0).sum(axis=1)                    # (B, D) f32

    # ---- Tile selection.
    if tile_b is None:
        tile_b = 256 if B >= 256 else _round_up(max(B, 1), 16)           # small-batch friendly
    tile_b = max(16, min(tile_b, 256))
    tile_v = max(128, min(tile_v, _round_up(V, 128)))

    Bp = _round_up(B, tile_b)
    Vp = _round_up(V, tile_v)
    Dp = _round_up(D, 128)

    # ---- One-time HBM-side layout work: pad, transpose W, cast matmul operands to bf16.
    ctx_p = jnp.pad(ctx, ((0, Bp - B), (0, Dp - D))).astype(compute_dtype)       # (Bp, Dp)
    wt_p = jnp.pad(weight.T, ((0, Dp - D), (0, Vp - V))).astype(compute_dtype)   # (Dp, Vp)
    b_p = jnp.pad(bias, (0, Vp - V)).reshape(1, Vp).astype(jnp.float32)          # (1, Vp)

    # ---- Explicit VMEM budget (double-buffered input/output tiles + slack).
    isz = jnp.dtype(compute_dtype).itemsize
    vmem_need = 2 * (tile_b * Dp * isz + Dp * tile_v * isz
                     + tile_v * 4 + tile_b * tile_v * 4)
    vmem_limit = int(min(max(vmem_need + (4 << 20), 16 << 20), 64 << 20))

    # Vocab OUTER, batch INNER: the W tile's block index depends only on vi, so each
    # weight tile streams from HBM once and stays resident across all batch tiles.
    grid = (Vp // tile_v, Bp // tile_b)

    out = pl.pallas_call(
        _proj_kernel,
        out_shape=jax.ShapeDtypeStruct((Bp, Vp), jnp.float32),
        grid=grid,
        in_specs=[
            pl.BlockSpec((tile_b, Dp), lambda vi, bi: (bi, 0)),   # ctx tile
            pl.BlockSpec((Dp, tile_v), lambda vi, bi: (0, vi)),   # W.T tile (batch-invariant)
            pl.BlockSpec((1, tile_v), lambda vi, bi: (0, vi)),    # bias tile
        ],
        out_specs=pl.BlockSpec((tile_b, tile_v), lambda vi, bi: (bi, vi)),
        compiler_params=pltpu.CompilerParams(
            # No scratch carry -> both axes independent; lets v7x shard the vocab axis
            # across its two TensorCores even when Bp // tile_b == 1.
            dimension_semantics=("parallel", "parallel"),
            vmem_limit_bytes=vmem_limit,
        ),
    )(ctx_p, wt_p, b_p)

    return out[:B, :V]


if __name__ == "__main__":
    # Small, module-consistent shapes (embedding_dim = 128 from the spec).
    VOCAB_SIZE = 256     # len(word2idx) stand-in
    EMBED_DIM = 128
    BATCH = 8
    CONTEXT = 4          # CBOW context window size

    key = jax.random.PRNGKey(0)
    k_emb, k_w, k_b, k_idx = jax.random.split(key, 4)

    # nn.Embedding default init: N(0, 1)
    emb_table = jax.random.normal(k_emb, (VOCAB_SIZE, EMBED_DIM), jnp.float32)
    # nn.Linear default init: U(-1/sqrt(D), 1/sqrt(D)) for weight and bias
    bound = 1.0 / (EMBED_DIM ** 0.5)
    w = jax.random.uniform(k_w, (VOCAB_SIZE, EMBED_DIM), jnp.float32,
                           minval=-bound, maxval=bound)          # PyTorch (V, D) layout
    b = jax.random.uniform(k_b, (VOCAB_SIZE,), jnp.float32,
                           minval=-bound, maxval=bound)

    context_words = jax.random.randint(
        k_idx, (BATCH, CONTEXT), 0, VOCAB_SIZE, dtype=jnp.int32)

    out = cbow_forward(context_words, emb_table, w, b)
    out = jax.block_until_ready(out)
    assert out.shape == (BATCH, VOCAB_SIZE)

    # Pure-JAX reference checks.
    ctx_f32 = jnp.take(emb_table, context_words, axis=0).sum(axis=1)
    ref_f32 = ctx_f32 @ w.T + b
    # Kernel does the matmul in bf16 (f32 accumulation): compare tightly against the
    # same-rounded reference, and loosely against the full-f32 module output.
    ref_bf16 = (ctx_f32.astype(jnp.bfloat16).astype(jnp.float32)
                @ w.T.astype(jnp.bfloat16).astype(jnp.float32)) + b
    assert jnp.allclose(out, ref_bf16, atol=2e-3, rtol=2e-3), "mismatch vs bf16-rounded reference"
    assert jnp.allclose(out, ref_f32, atol=2e-1, rtol=2e-1), "mismatch vs f32 reference"

    print("KERNEL_OK")
</pallas_src>

<mosaic_0001>
module attributes {stable_mosaic.version = 11 : i64} {
  func.func @_proj_kernel(%arg0: i32, %arg1: i32, %arg2: memref<16x128xbf16, #tpu.memory_space<vmem>>, %arg3: memref<128x256xbf16, #tpu.memory_space<vmem>>, %arg4: memref<1x256xf32, #tpu.memory_space<vmem>>, %arg5: memref<16x256xf32, #tpu.memory_space<vmem>>) attributes {dimension_semantics = [#tpu.dimension_semantics<parallel>, #tpu.dimension_semantics<parallel>], iteration_bounds = array<i64: 1, 1>, scalar_prefetch = 0 : i64, scratch_operands = 0 : i64, tpu.core_type = #tpu.core_type<tc>, window_params = [{transform_indices = @transform_0, window_bounds = array<i64: 16, 128>}, {transform_indices = @transform_1, window_bounds = array<i64: 128, 256>}, {transform_indices = @transform_2, window_bounds = array<i64: 1, 256>}, {transform_indices = @transform_3, window_bounds = array<i64: 16, 256>}]} {
    %c0 = arith.constant 0 : index
    %c0_0 = arith.constant 0 : index
    %0 = vector.load %arg2[%c0, %c0_0] : memref<16x128xbf16, #tpu.memory_space<vmem>>, vector<16x128xbf16>
    %c0_1 = arith.constant 0 : index
    %c0_2 = arith.constant 0 : index
    %1 = vector.load %arg3[%c0_1, %c0_2] : memref<128x256xbf16, #tpu.memory_space<vmem>>, vector<128x256xbf16>
    %cst = arith.constant dense<0.000000e+00> : vector<16x256xf32>
    %2 = tpu.matmul %0, %1, %cst {dimension_numbers = #tpu.dot_dimension_numbers<[1], [0], [0], [1], [0, 0, 1, 1], [], []>} : vector<16x128xbf16>, vector<128x256xbf16>, vector<16x256xf32> -> vector<16x256xf32>
    %c0_3 = arith.constant 0 : index
    %c0_4 = arith.constant 0 : index
    %3 = vector.load %arg4[%c0_3, %c0_4] : memref<1x256xf32, #tpu.memory_space<vmem>>, vector<1x256xf32>
    %4 = vector.broadcast %3 : vector<1x256xf32> to vector<16x256xf32>
    %5 = arith.addf %2, %4 : vector<16x256xf32>
    %c0_5 = arith.constant 0 : index
    %c0_6 = arith.constant 0 : index
    %6 = vector.load %arg5[%c0_5, %c0_6] : memref<16x256xf32, #tpu.memory_space<vmem>>, vector<16x256xf32>
    tpu.vector_store %arg5[%c0_5, %c0_6], %5 {strides = array<i32>} : memref<16x256xf32, #tpu.memory_space<vmem>>, vector<16x256xf32>,
    return
  }
  func.func @transform_0(%arg0: i32, %arg1: i32) -> (i32, i32) {
    %c0_i32 = arith.constant 0 : i32
    %c0_i32_0 = arith.constant 0 : i32
    return %arg1, %c0_i32 : i32, i32
  }
  func.func @transform_1(%arg0: i32, %arg1: i32) -> (i32, i32) {
    %c0_i32 = arith.constant 0 : i32
    %c0_i32_0 = arith.constant 0 : i32
    return %c0_i32, %arg0 : i32, i32
  }
  func.func @transform_2(%arg0: i32, %arg1: i32) -> (i32, i32) {
    %c0_i32 = arith.constant 0 : i32
    %c0_i32_0 = arith.constant 0 : i32
    return %c0_i32, %arg0 : i32, i32
  }
  func.func @transform_3(%arg0: i32, %arg1: i32) -> (i32, i32) {
    %c0_i32 = arith.constant 0 : i32
    return %arg1, %arg0 : i32, i32
  }
}

</mosaic_0001>

<bundles_post_ra>
// kernel: tpu_custom_call.1
= control target key start
LH: loop header
LB: loop body
LE: loop exit
PB: predicated region body
PF: predicated region fallthrough
CT: control target
= control target key end

     0   :  { %8 = vsyncpa [#allocation3], 0  ;;  %s418_s0 = inlined_call_operand.hbm [shape: bf16[16,128], index: 0, kind: input, shape index: {}]   ;;  %s419_s1 = inlined_call_operand.hbm [shape: bf16[128,256], index: 1, kind: input, shape index: {}]   ;;  %s420_s2 = inlined_call_operand.vmem [shape: f32[1,256], index: 2, kind: input, shape index: {}]   ;;  %s421_s3 = inlined_call_operand.hbm [shape: f32[16,256], index: 3, kind: output, shape index: {}]  }
   0x1   :  { %9 = vsyncpa [#allocation6], 0 }
   0x2   :  { %10 = vsyncpa [#allocation4], 0  ;;  %s349_s12 = smov [#allocation2]   ;;  %s277_s16 = scalar_lea.hbm %s418_s0, 128 }
   0x3   :  { %s16_s13 = sshll.u32 %s349_s12, 4  ;;  %p278_p0 = scmp.ne.s32.totalorder %s418_s0, %s277_s16  ;;  %s17_s13 = int_to_ptr.vmem [resolvable:$true] %s16_s13 }
   0x4   :  { %p281_p1 = scmp.lt.u32.totalorder %s277_s16, %s418_s0 }
   0x6   :  { %p283_p2 = pnand %p281_p1, %p278_p0 }
   0x8   :  { %286 = shalt.err (!%p283_p2)
}
   0x9   :  { %s287_s21 = scalar_lea.vmem %s17_s13, 128  ;;  %p292_p4 = scmp.lt.s32.totalorder %s17_s13, %s17_s13 }
   0xa   :  { %p288_p3 = scmp.ne.s32.totalorder %s17_s13, %s287_s21  ;;  %p293_p5 = scmp.lt.s32.totalorder %s287_s21, %s287_s21 }
   0xc   :  { %p294_p6 = por %p293_p5, %p292_p4 }
   0xe   :  { %p295_p7 = pnand %p294_p6, %p288_p3 }
  0x10   :  { %298 = shalt.err (!%p295_p7)
}
  0x11   :  { %s350_s22 = smov 64   ;;  %s351_s23 = smov 4  }
  0x12   :  { %22 = dma.hbm_to_vmem [thread:$0]  %s418_s0, 128, %s17_s13, [#allocation3], %s350_s22, %s350_s22, %s351_s23  }
  0x13   :  { %s352_s26 = smov [#allocation5]   ;;  %s299_s30 = scalar_lea.hbm %s419_s1, 2048 }
  0x14   :  { %s28_s27 = sshll.u32 %s352_s26, 4  ;;  %p300_p8 = scmp.ne.s32.totalorder %s419_s1, %s299_s30  ;;  %s29_s27 = int_to_ptr.vmem [resolvable:$true] %s28_s27 }
  0x15   :  { %p303_p9 = scmp.lt.u32.totalorder %s299_s30, %s419_s1 }
  0x17   :  { %p305_p10 = pnand %p303_p9, %p300_p8 }
  0x19   :  { %308 = shalt.err (!%p305_p10)
}
  0x1a   :  { %s309_s8 = scalar_lea.vmem %s29_s27, 2048  ;;  %p314_p12 = scmp.lt.s32.totalorder %s29_s27, %s29_s27 }
  0x1b   :  { %p310_p11 = scmp.ne.s32.totalorder %s29_s27, %s309_s8  ;;  %p315_p13 = scmp.lt.s32.totalorder %s309_s8, %s309_s8 }
  0x1d   :  { %p316_p0 = por %p315_p13, %p314_p12 }
  0x1f   :  { %p317_p1 = pnand %p316_p0, %p310_p11 }
  0x21   :  { %320 = shalt.err (!%p317_p1)
}
  0x22   :  { %s353_s0 = smov 128   ;;  %s354_s9 = smov 8  }
  0x23   :  { %34 = dma.hbm_to_vmem [thread:$0]  %s419_s1, 2048, %s29_s27, [#allocation6], %s353_s0, %s353_s0, %s354_s9  }
  0x24   :  { %343 = dma.done.wait [#allocation3], 128  }
  0x25   :  { %344 = vsyncadd [#allocation3], 4294967168 }
  0x26   :  { %345 = dma.done.wait [#allocation6], 2048  }
  0x27   :  { %346 = vsyncadd [#allocation6], 4294965248  ;;  %v355_v0 = vmov 0   ;;  %v252_v1 = vld [vmem:[#allocation5 + $0x4] ss:$8 sps:$4 sm:$0xff]   ;;  %v276_v17 = vld [vmem:[#allocation2] sm:$0xff]   ;;  %v64_v18 = vlaneseq }
  0x28   :  { %192 = vmatprep.mubr.bf16.mxu0 %v355_v0  ;;  %v254_v2 = vld [vmem:[#allocation5] ss:$8 sps:$4 sm:$0xff]   ;;  %160 = vmatprep.subr.bf16.mxu0 %v252_v1  ;;  %v255_v3 = vld [vmem:[#allocation5 + $0x14] ss:$8 sps:$4 sm:$0xff]   ;;  %v257_v4 = vld [vmem:[#allocation5 + $0x10] ss:$8 sps:$4 sm:$0xff]  }
  0x29   :  { %161 = vmatpush1.bf16.msra.mxu0 %v254_v2  ;;  %v258_v5 = vld [vmem:[#allocation5 + $0x24] ss:$8 sps:$4 sm:$0xff]   ;;  %v260_v6 = vld [vmem:[#allocation5 + $0x20] ss:$8 sps:$4 sm:$0xff]   ;;  %v261_v7 = vld [vmem:[#allocation5 + $0x34] ss:$8 sps:$4 sm:$0xff]  }
  0x2a   :  { %162 = vmatprep.subr.bf16.mxu0 %v255_v3  ;;  %v263_v8 = vld [vmem:[#allocation5 + $0x30] ss:$8 sps:$4 sm:$0xff]   ;;  %v264_v9 = vld [vmem:[#allocation5 + $0x44] ss:$8 sps:$4 sm:$0xff]   ;;  %v266_v10 = vld [vmem:[#allocation5 + $0x40] ss:$8 sps:$4 sm:$0xff]  }
  0x2b   :  { %v267_v11 = vld [vmem:[#allocation5 + $0x54] ss:$8 sps:$4 sm:$0xff]   ;;  %v269_v12 = vld [vmem:[#allocation5 + $0x50] ss:$8 sps:$4 sm:$0xff]   ;;  %v270_v13 = vld [vmem:[#allocation5 + $0x64] ss:$8 sps:$4 sm:$0xff]  }
  0x2c   :  { %v272_v14 = vld [vmem:[#allocation5 + $0x60] ss:$8 sps:$4 sm:$0xff]   ;;  %v273_v15 = vld [vmem:[#allocation5 + $0x74] ss:$8 sps:$4 sm:$0xff]   ;;  %v275_v16 = vld [vmem:[#allocation5 + $0x70] ss:$8 sps:$4 sm:$0xff]  }
  0x2d   :  { %163 = vmatpush1.bf16.msra.mxu0 %v257_v4  ;;  %v65_v19 = vshrl.u32 %v64_v18, 7  ;;  %v62_v21 = vld [vmem:[%s420_s2] sm:$0x3]  ;;  %s356_s13 = smov [#allocation7]  }
  0x2e   :  { %164 = vmatprep.subr.bf16.mxu0 %v258_v5  ;;  %s212_s14 = sshll.u32 %s356_s13, 4  ;;  %s213_s14 = int_to_ptr.vmem [resolvable:$true] %s212_s14 }
  0x2f   :  { %v66_v20 = vsub.s32 0, %v65_v19  ;;  %v70_v22 = vsub.s32 1, %v65_v19  ;;  %s321_s15 = scalar_lea.vmem %s213_s14, 512  ;;  %p326_p3 = scmp.lt.s32.totalorder %s213_s14, %s213_s14 }
  0x30   :  { %p322_p2 = scmp.ne.s32.totalorder %s213_s14, %s321_s15  ;;  %p327_p4 = scmp.lt.s32.totalorder %s321_s15, %s321_s15 }
  0x31   :  { %165 = vmatpush1.bf16.msra.mxu0 %v260_v6  ;;  %v67_v23 = vrot.slane %v62_v21, %v66_v20  ;;  %v71_v24 = vrot.slane %v62_v21, %v70_v22 }
  0x32   :  { %166 = vmatprep.subr.bf16.mxu0 %v261_v7  ;;  %p328_p5 = por %p327_p4, %p326_p3 }
  0x34   :  { %p329_p6 = pnand %p328_p5, %p322_p2 }
  0x35   :  { %167 = vmatpush1.bf16.msra.mxu0 %v263_v8 }
  0x36   :  { %168 = vmatprep.subr.bf16.mxu0 %v264_v9 }
  0x39   :  { %169 = vmatpush1.bf16.msra.mxu0 %v266_v10 }
  0x3a   :  { %170 = vmatprep.subr.bf16.mxu0 %v267_v11 }
  0x3d   :  { %171 = vmatpush1.bf16.msra.mxu0 %v269_v12 }
  0x3e   :  { %172 = vmatprep.subr.bf16.mxu0 %v270_v13 }
  0x41   :  { %173 = vmatpush1.bf16.msra.mxu0 %v272_v14 }
  0x42   :  { %174 = vmatprep.subr.bf16.mxu0 %v273_v15 }
  0x45   :  { %175 = vmatpush1.bf16.msra.mxu0 %v275_v16 }
  0x48   :  { %193 = vmatmul.mubr.bf16.vlgmr.msra.gmra.mrb[0].mxu0 %v276_v17 }
 0x11b   :  { %v194_v25 = vpop.f32.mrb[0].mxu0 }
 0x11c   :  { %v195_v26 = vadd.f32 %v194_v25, %v67_v23  ;;  %v196_v27 = vpop.f32.mrb[1].mxu0 }
 0x11d   :  { %v197_v28 = vadd.f32 %v196_v27, %v71_v24  ;;  %v198_v29 = vpop.f32.mrb[2].mxu0 }
 0x11e   :  { %203 = vst [vmem:[#allocation7] sm:$0xff] %v195_v26  ;;  %v199_v30 = vadd.f32 %v198_v29, %v67_v23  ;;  %v200_v31 = vpop.f32.mrb[3].mxu0 }
 0x11f   :  { %204 = vst [vmem:[#allocation7 + $0x8] sm:$0xff] %v197_v28  ;;  %v201_v32 = vadd.f32 %v200_v31, %v71_v24 }
 0x120   :  { %205 = vst [vmem:[#allocation7 + $0x10] sm:$0xff] %v199_v30 }
 0x121   :  { %206 = vst [vmem:[#allocation7 + $0x18] sm:$0xff] %v201_v32 }
 0x122   :  { %332 = shalt.err (!%p329_p6)
}
 0x123   :  { %s333_s17 = scalar_lea.hbm %s421_s3, 512 }
 0x124   :  { %p334_p7 = scmp.ne.s32.totalorder %s421_s3, %s333_s17  ;;  %p337_p8 = scmp.lt.u32.totalorder %s333_s17, %s421_s3 }
 0x126   :  { %p339_p9 = pnand %p337_p8, %p334_p7 }
 0x128   :  { %342 = shalt.err (!%p339_p9)
}
 0x129   :  { %s357_s22 = smov 256   ;;  %s358_s23 = smov 16  }
 0x12a   :  { %218 = dma.vmem_to_hbm [thread:$0]  %s213_s14, 512, %s421_s3, [#allocation4], %s357_s22, %s357_s22, %s358_s23  }
 0x12b   :  { %347 = dma.done.wait [#allocation4], 512  }
 0x12c   :  { %348 = vsyncadd [#allocation4], 4294966784 }
 0x12d   :  { %222 = vsyncpa [#allocation3], 1 }
 0x12e   :  { %223 = vsyncpa [#allocation6], 1 }
 0x12f   :  { %224 = vsyncpa [#allocation4], 1 }

</bundles_post_ra>
